<compile_context>
chip_gen: v6e
topology: v6e:2x2x1
jax: 0.10.0
libtpu: 0.0.40
codegen_flags: <defaults>
</compile_context>

<pallas_src>
import math
import jax
import jax.numpy as jnp
from jax.experimental import pallas as pl
from jax.experimental.pallas import tpu as pltpu

EPS = 1e-08


def hadamard_matrix(n: int) -> jnp.ndarray:
    """Sylvester construction of an n x n Hadamard matrix (n a power of 2)."""
    assert n > 0 and (n & (n - 1)) == 0, "n must be a power of 2"
    H = jnp.array([[1.0]], dtype=jnp.float32)
    while H.shape[0] < n:
        H = jnp.concatenate(
            [jnp.concatenate([H, H], axis=1),
             jnp.concatenate([H, -H], axis=1)],
            axis=0,
        )
    return H


def _round_up(v: int, m: int) -> int:
    return (v + m - 1) // m * m


def hadamard_proj_kernel(x_ref, wt_ref, bias_ref, scale_ref, o_ref):
    # x_ref:     (TB, Kp)  VMEM  batch tile (zero-padded columns)
    # wt_ref:    (Kp, Np)  VMEM  pre-transposed, zero-padded, bf16 Hadamard slice
    # bias_ref:  (1,  Np)  VMEM  zero-padded bias (f32)
    # scale_ref: (1,)      SMEM  scalar scale
    # o_ref:     (TB, Np)  VMEM
    x = x_ref[...].astype(jnp.float32)

    # L2 norm along the last dim (padded columns are zero -> norm unchanged).
    norm = jnp.sqrt(jnp.sum(x * x, axis=-1, keepdims=True))

    # Fold -scale into the per-row normalization factor; approx reciprocal
    # runs on the EUP slot (off the VPU critical path).
    inv = pl.reciprocal(norm + EPS, approx=True) * (-scale_ref[0])

    # bf16 operands -> native MXU path; f32 accumulation.
    x_s = (x * inv).astype(jnp.bfloat16)
    y = jnp.dot(x_s, wt_ref[...], preferred_element_type=jnp.float32)

    o_ref[...] = (y + bias_ref[...]).astype(o_ref.dtype)


def hadamard_proj(x, w, bias, scale, *, block_b: int = 512):
    """x: (B, input_size); w: (output_size, input_size) (+/-1 Hadamard slice);
    bias: (output_size,) or (1, output_size); scale: (1,)."""
    B, K = x.shape
    N, Kw = w.shape
    assert Kw == K

    # Lane-dense padded sizes.
    Kp = _round_up(K, 128)
    Np = _round_up(N, 128)

    # Static weight prep (trace time): transpose + zero-pad + bf16 (lossless for +/-1).
    wt = jnp.zeros((Kp, Np), jnp.bfloat16).at[:K, :N].set(
        w.T.astype(jnp.bfloat16))
    bias_p = jnp.zeros((1, Np), jnp.float32).at[0, :N].set(
        bias.reshape(-1).astype(jnp.float32))

    # Batch tiling (second-to-last dim must be a multiple of 8).
    TB = min(block_b, _round_up(B, 8))
    Bp = _round_up(B, TB)

    xp = x
    if (Bp != B) or (Kp != K):
        xp = jnp.zeros((Bp, Kp), x.dtype).at[:B, :K].set(x)

    grid = (Bp // TB,)

    out_itemsize = jnp.dtype(x.dtype).itemsize
    x_itemsize = jnp.dtype(xp.dtype).itemsize
    # Resident W(bf16)+bias plus double-buffered x/out tiles, plus headroom.
    vmem_need = (2 * TB * Kp * x_itemsize
                 + 2 * TB * Np * out_itemsize
                 + Kp * Np * 2 + Np * 4)
    vmem_limit = int(max(vmem_need + (4 << 20), 16 << 20))
    # TODO(synk): for very large Hadamard sizes (bf16 W no longer VMEM-resident,
    # e.g. sz >= 8192 on v7x), add a K-reduction grid axis with an f32
    # accumulator scratch (pl.when init/finalize) instead of a resident W.

    cost = pl.CostEstimate(
        flops=2 * Bp * Kp * Np,
        transcendentals=Bp,
        bytes_accessed=(xp.size * x_itemsize + wt.size * 2
                        + bias_p.size * 4 + Bp * Np * out_itemsize),
    )

    out_p = pl.pallas_call(
        hadamard_proj_kernel,
        out_shape=jax.ShapeDtypeStruct((Bp, Np), x.dtype),
        grid=grid,
        in_specs=[
            pl.BlockSpec((TB, Kp), lambda i: (i, 0)),   # x tile (pipelined)
            pl.BlockSpec((Kp, Np), lambda i: (0, 0)),   # W^T (resident)
            pl.BlockSpec((1, Np), lambda i: (0, 0)),    # bias (resident)
            pl.BlockSpec(memory_space=pltpu.SMEM),      # scale scalar
        ],
        out_specs=pl.BlockSpec((TB, Np), lambda i: (i, 0)),
        compiler_params=pltpu.CompilerParams(
            dimension_semantics=("parallel",),
            vmem_limit_bytes=vmem_limit,
        ),
        cost_estimate=cost,
    )(xp, wt, bias_p, scale.astype(jnp.float32))

    # Slice away batch / lane padding.
    return out_p[:B, :N]


def reference(x, w, bias, scale):
    norm = jnp.sqrt(jnp.sum(x * x, axis=-1, keepdims=True))
    x_n = x / (norm + EPS)
    return -scale[0] * (x_n @ w.T) + bias.reshape(1, -1)


if __name__ == "__main__":
    key = jax.random.PRNGKey(0)
    k_x, k_b = jax.random.split(key)

    batch = 16
    input_size = 32
    output_size = 16

    # Module parameter setup (__init__ semantics), deterministic in-script.
    sz = 2 ** int(math.ceil(math.log2(max(input_size, output_size))))
    proj = hadamard_matrix(sz)                       # (sz, sz), +/-1 float32
    w = proj[:output_size, :input_size]              # fixed weights slice
    init_scale = 1.0 / math.sqrt(output_size)
    scale = jnp.array([init_scale], dtype=jnp.float32)
    bias = jax.random.uniform(
        k_b, (output_size,), dtype=jnp.float32,
        minval=-init_scale, maxval=init_scale)

    x = jax.random.normal(k_x, (batch, input_size), dtype=jnp.float32)

    # block_b=8 -> grid of 2 batch tiles, exercising the pipelined grid.
    out = hadamard_proj(x, w, bias, scale, block_b=8)
    out = jax.block_until_ready(out)

    ref = reference(x, w, bias, scale)
    assert out.shape == (batch, output_size)
    max_err = float(jnp.max(jnp.abs(out - ref)))
    # bf16 MXU operands + approx reciprocal perturb results at ~1e-3; tolerance
    # loosened accordingly (vs. the full-f32 reference).
    assert jnp.allclose(out, ref, atol=3e-2, rtol=3e-2), (
        f"mismatch vs reference, max abs err {max_err}")

    print("KERNEL_OK")
</pallas_src>

<mosaic_0001>
module attributes {stable_mosaic.version = 11 : i64} {
  func.func @hadamard_proj_kernel(%arg0: i32, %arg1: memref<8x128xf32, #tpu.memory_space<vmem>>, %arg2: memref<128x128xbf16, #tpu.memory_space<vmem>>, %arg3: memref<1x128xf32, #tpu.memory_space<vmem>>, %arg4: memref<1xf32, #tpu.memory_space<smem>>, %arg5: memref<8x128xf32, #tpu.memory_space<vmem>>) attributes {dimension_semantics = [#tpu.dimension_semantics<parallel>], iteration_bounds = array<i64: 2>, scalar_prefetch = 0 : i64, scratch_operands = 0 : i64, tpu.core_type = #tpu.core_type<tc>, window_params = [{transform_indices = @transform_0, window_bounds = array<i64: 8, 128>}, {pipeline_mode = #tpu.pipeline_mode<synchronous>, transform_indices = @transform_1, window_bounds = array<i64: 128, 128>}, {pipeline_mode = #tpu.pipeline_mode<synchronous>, transform_indices = @transform_2, window_bounds = array<i64: 1, 128>}, {transform_indices = @transform_3, window_bounds = array<i64: 1>}, {transform_indices = @transform_4, window_bounds = array<i64: 8, 128>}]} {
    %c0 = arith.constant 0 : index
    %c0_0 = arith.constant 0 : index
    %0 = vector.load %arg1[%c0, %c0_0] : memref<8x128xf32, #tpu.memory_space<vmem>>, vector<8x128xf32>
    %1 = arith.mulf %0, %0 : vector<8x128xf32>
    %cst = arith.constant dense<0.000000e+00> : vector<8xf32>
    %2 = vector.multi_reduction <add>, %1, %cst [1] : vector<8x128xf32> to vector<8xf32>
    %3 = vector.shape_cast %2 : vector<8xf32> to vector<8x1xf32>
    %4 = math.sqrt %3 : vector<8x1xf32>
    %cst_1 = arith.constant 9.99999993E-9 : f32
    %5 = vector.broadcast %cst_1 : f32 to vector<8x1xf32>
    %6 = arith.addf %4, %5 : vector<8x1xf32>
    %7 = tpu.reciprocal %6 {approx = true} : vector<8x1xf32> -> vector<8x1xf32>
    %c0_2 = arith.constant 0 : index
    %8 = memref.load %arg4[%c0_2] : memref<1xf32, #tpu.memory_space<smem>>
    %cst_3 = arith.constant 0.000000e+00 : f32
    %9 = arith.subf %cst_3, %8 : f32
    %10 = vector.broadcast %9 : f32 to vector<8x1xf32>
    %11 = arith.mulf %7, %10 : vector<8x1xf32>
    %12 = vector.broadcast %11 : vector<8x1xf32> to vector<8x128xf32>
    %13 = arith.mulf %0, %12 : vector<8x128xf32>
    %14 = arith.truncf %13 : vector<8x128xf32> to vector<8x128xbf16>
    %c0_4 = arith.constant 0 : index
    %c0_5 = arith.constant 0 : index
    %15 = vector.load %arg2[%c0_4, %c0_5] : memref<128x128xbf16, #tpu.memory_space<vmem>>, vector<128x128xbf16>
    %cst_6 = arith.constant dense<0.000000e+00> : vector<8x128xf32>
    %16 = tpu.matmul %14, %15, %cst_6 {dimension_numbers = #tpu.dot_dimension_numbers<[1], [0], [0], [1], [0, 0, 1, 1], [], []>} : vector<8x128xbf16>, vector<128x128xbf16>, vector<8x128xf32> -> vector<8x128xf32>
    %c0_7 = arith.constant 0 : index
    %c0_8 = arith.constant 0 : index
    %17 = vector.load %arg3[%c0_7, %c0_8] : memref<1x128xf32, #tpu.memory_space<vmem>>, vector<1x128xf32>
    %18 = vector.broadcast %17 : vector<1x128xf32> to vector<8x128xf32>
    %19 = arith.addf %16, %18 : vector<8x128xf32>
    %c0_9 = arith.constant 0 : index
    %c0_10 = arith.constant 0 : index
    %20 = vector.load %arg5[%c0_9, %c0_10] : memref<8x128xf32, #tpu.memory_space<vmem>>, vector<8x128xf32>
    tpu.vector_store %arg5[%c0_9, %c0_10], %19 {strides = array<i32>} : memref<8x128xf32, #tpu.memory_space<vmem>>, vector<8x128xf32>,
    return
  }
  func.func @transform_0(%arg0: i32) -> (i32, i32) {
    %c0_i32 = arith.constant 0 : i32
    %c0_i32_0 = arith.constant 0 : i32
    return %arg0, %c0_i32 : i32, i32
  }
  func.func @transform_1(%arg0: i32) -> (i32, i32) {
    %c0_i32 = arith.constant 0 : i32
    %c0_i32_0 = arith.constant 0 : i32
    %c0_i32_1 = arith.constant 0 : i32
    return %c0_i32, %c0_i32_0 : i32, i32
  }
  func.func @transform_2(%arg0: i32) -> (i32, i32) {
    %c0_i32 = arith.constant 0 : i32
    %c0_i32_0 = arith.constant 0 : i32
    %c0_i32_1 = arith.constant 0 : i32
    return %c0_i32, %c0_i32_0 : i32, i32
  }
  func.func @transform_3(%arg0: i32) -> i32 {
    %c0_i32 = arith.constant 0 : i32
    %c0_i32_0 = arith.constant 0 : i32
    return %c0_i32 : i32
  }
  func.func @transform_4(%arg0: i32) -> (i32, i32) {
    %c0_i32 = arith.constant 0 : i32
    %c0_i32_0 = arith.constant 0 : i32
    return %arg0, %c0_i32 : i32, i32
  }
}

</mosaic_0001>

<bundles_post_ra>
// kernel: tpu_custom_call.1
= control target key start
LH: loop header
LB: loop body
LE: loop exit
PB: predicated region body
PF: predicated region fallthrough
CT: control target
= control target key end

     0   :  { %s912_s0 = inlined_call_operand.hbm [shape: f32[16,128], index: 0, kind: input, shape index: {}]   ;;  %s913_s1 = inlined_call_operand.hbm [shape: bf16[128,128], index: 1, kind: input, shape index: {}]   ;;  %s914_s2 = inlined_call_operand.vmem [shape: f32[1,128], index: 2, kind: input, shape index: {}]   ;;  %s915_s3 = inlined_call_operand.<no memory space> [shape: f32[1], index: 3, kind: input, shape index: {}]   ;;  %s916_s4 = inlined_call_operand.hbm [shape: f32[16,128], index: 4, kind: output, shape index: {}]  }
   0x1   :  { %9 = sst [smem:[#allocation2]] %s915_s3 }
   0x2   :  { %10 = vsyncpa [#allocation4], 0 }
   0x3   :  { %12 = vsyncpa [#allocation4 + $0x1], 0 }
   0x4   :  { %13 = vsyncpa [#allocation7], 0 }
   0x5   :  { %14 = vsyncpa [#allocation5], 0 }
   0x6   :  { %16 = vsyncpa [#allocation5 + $0x1], 0  ;;  %s739_s17 = smov 0   ;;  %s741_s18 = smov 0  }
   0x7   :  { %s743_s19 = smov 0   ;;  %s745_s20 = smov 0  }
   0x8 LB: > { %s760_s3 = sadd.s32 4294967295, %s702_s20   ;;  %s455_s21 = sadd.s32 4294967294, %s702_s20   ;;  %s702_s20 = sphi %s745_s20, %s938_s20   ;;  %s698_s19 = sphi %s743_s19, %s937_s19   ;;  %s694_s18 = sphi %s741_s18, %s936_s18   ;;  %s690_s17 = sphi %s739_s17, %s935_s17  }
   0x9   : > { %p42_p0 = scmp.ne.s32.totalorder %s694_s18, %s690_s17  ;;  %p917_p1 = scmp.eq.s32.totalorder %s760_s3, 0 }
   0xa   : > { %p135_p3 = scmp.eq.s32.totalorder %s455_s21, 1  ;;  %p456_p5 = scmp.ge.s32.totalorder %s702_s20, 1 }
   0xb   : > { %p769_p4 = por %p917_p1, %p42_p0  ;;  %p142_p7 = scmp.lt.s32.totalorder %s702_s20, 3 }
   0xc   : > { %p774_p6 = por %p135_p3, %p42_p0  ;;  %s704_s25 = smov [#allocation6]  }
   0xd   : > { %s921_s22 = scalar_select %p769_p4, 1, 0 }
   0xe   : > { %s922_s23 = scalar_select %p774_p6, 1, 0 }
   0xf   : > { %p779_p8 = pnand %p456_p5, %p142_p7  ;;  %s154_s26 = sshll.u32 %s704_s25, 4  ;;  %s155_s26 = int_to_ptr.vmem [resolvable:$true] %s154_s26 }
  0x10   : > { %s793_s28 = sadd.s32 1, %s702_s20   ;;  %s29_s29 = sadd.s32 1, %s698_s19 }
  0x11   : > { %s923_s24 = scalar_select %p779_p8, 1, 0 }
  0x12   : > { %p515_p9 = pneg %p779_p8  ;;  %s26_s30 = ssub.s32 %s702_s20, %s793_s28 }
  0x13   : > { %s591_s5 = scalar_lea.vmem %s155_s26, 1024  ;;  %p599_p5 = scmp.lt.s32.totalorder %s155_s26, %s155_s26 }
  0x14   : > { %p788_p11 = pnand %p515_p9, %p917_p1  ;;  %p592_p13 = scmp.ne.s32.totalorder %s155_s26, %s591_s5 }
  0x15   : > { %p600_p7 = scmp.lt.s32.totalorder %s591_s5, %s591_s5 }
  0x16   : > { %p582_p12 = pneg %p788_p11 }
  0x17   : > { %p601_p10 = por %p600_p7, %p599_p5 }
  0x18   : > { %p594_p0 = pnand %p592_p13, %p582_p12 }
  0x1a   : > { %p595_p3 = pneg %p594_p0 }
  0x1c   : > { %p602_p2 = pnand %p601_p10, %p595_p3 }
  0x1e   : > { %605 = shalt.err (!%p602_p2)
}
  0x1f   : > { %s705_s6 = smov 64   ;;  %s706_s7 = smov 4  }
  0x20   : > { %518 = dma.hbm_to_vmem [thread:$0]  (!%p788_p11), %s913_s1, 1024, %s155_s26, [#allocation7], %s705_s6, %s705_s6, %s706_s7  }
  0x21   : > { %p27_p9 = scmp.eq.s32.totalorder %s26_s30, 0  ;;  %p36_p12 = scmp.ne.s32.totalorder %s698_s19, %s694_s18 }
  0x22   : > { %p37_p10 = scmp.eq.s32.totalorder %s702_s20, 0  ;;  %p528_p2 = scmp.lt.s32.totalorder %s702_s20, 2 }
  0x23   : > { %s810_s10 = scalar_select %p27_p9, %s698_s19, %s29_s29  }
  0x24   : > { %p38_p13 = por %p37_p10, %p36_p12  ;;  %p925_p0 = scmp.eq.s32.totalorder %s760_s3, 1 }
  0x25   : > { %s174_s12 = sand.u32 1, %s698_s19   ;;  %s460_s13 = sshll.u32 %s702_s20, 7 }
  0x26   : > { %p814_p3 = por %p925_p0, %p36_p12  ;;  %s459_s14 = sshll.u32 %s174_s12, 3 }
  0x27   : > { %s823_s21 = scalar_lea.hbm %s912_s0, %s460_s13  ;;  %s178_s25 = scalar_lea.vmem [#allocation3], %s459_s14 }
  0x28   : > { %s926_s11 = scalar_select %p814_p3, 1, 0 }
  0x29   : > { %s185_s26 = sshll.u32 %s178_s25, 4  ;;  %p825_p11 = pnand %p528_p2, %p38_p13  ;;  %s186_s26 = int_to_ptr.vmem [resolvable:$true] %s185_s26 }
  0x2a   : > { %s175_s29 = scalar_lea.sflag [#allocation4], %s174_s12  ;;  %s606_s30 = scalar_lea.hbm %s823_s21, 128 }
  0x2b   : > { %p607_p5 = scmp.ne.s32.totalorder %s823_s21, %s606_s30  ;;  %p608_p7 = pneg %p825_p11 }
  0x2c   : > { %s611_s7 = scalar_lea.hbm %s912_s0, 256  ;;  %p612_p10 = scmp.lt.s32.totalorder %s823_s21, %s912_s0 }
  0x2d   : > { %p609_p9 = pnand %p608_p7, %p607_p5  ;;  %p613_p2 = scmp.lt.s32.totalorder %s611_s7, %s606_s30 }
  0x2f   : > { %p610_p12 = pneg %p609_p9  ;;  %p614_p13 = por %p613_p2, %p612_p10 }
  0x31   : > { %p615_p0 = pnand %p614_p13, %p610_p12 }
  0x33   : > { %618 = shalt.err (!%p615_p0)
}
  0x34   : > { %s619_s13 = scalar_lea.vmem %s186_s26, 128  ;;  %s707_s12 = smov [#allocation3]  }
  0x35   : > { %p620_p1 = scmp.ne.s32.totalorder %s186_s26, %s619_s13  ;;  %s624_s14 = sshll.u32 %s707_s12, 4  ;;  %s625_s14 = int_to_ptr.vmem [resolvable:$false] %s624_s14 }
  0x36   : > { %s626_s15 = scalar_lea.vmem %s625_s14, 256  ;;  %p627_p5 = scmp.lt.s32.totalorder %s186_s26, %s625_s14 }
  0x37   : > { %p622_p6 = pnand %p620_p1, %p608_p7  ;;  %p628_p9 = scmp.lt.s32.totalorder %s626_s15, %s619_s13 }
  0x39   : > { %p623_p3 = pneg %p622_p6  ;;  %p629_p4 = por %p628_p9, %p627_p5 }
  0x3b   : > { %p630_p8 = pnand %p629_p4, %p623_p3 }
  0x3d   : > { %633 = shalt.err (!%p630_p8)
}
  0x3e   : > { %522 = dma.hbm_to_vmem [thread:$0]  (!%p825_p11), %s823_s21, 128, %s186_s26, %s175_s29  }
  0x3f   : > { %p928_p12 = scmp.ne.s32.totalorder %s923_s24, 0 }
  0x40   : > { %s846_s16 = sand.u32 (!%p928_p12), 1, %s694_s18   ;;  %p929_p1 = scmp.ne.s32.totalorder (!%p928_p12), %s921_s22, 0 }
  0x41   : > { %194 = sbr.rel (%p928_p12) target bundleno = 464 (0x1d0), region = 36  ;;  %s462_s25 = sshll.u32 (!%p928_p12), %s846_s16, 3 }
  0x42   : > { %s197_s30 = scalar_lea.sflag (!%p928_p12), [#allocation4], %s846_s16  ;;  %s200_s5 = scalar_lea.vmem (!%p928_p12), [#allocation3], %s462_s25 }
  0x46   : > { %677 = dma.done.wait (%p929_p1), %s197_s30, 128  }
  0x47   : > { %679 = vsyncadd (%p929_p1), %s197_s30, 4294967168  ;;  %p930_p4 = scmp.eq.s32.totalorder %s760_s3, 0 }
  0x49   : > { %681 = dma.done.wait (%p930_p4), [#allocation7], 1024   ;;  %p931_p6 = pmov %p930_p4 }
  0x4a   : > { %v230_v0 = vld [vmem:[%s200_s5] sm:$0xff]  ;;  %v708_v3 = vmov 0.0   ;;  %v570_v5 = vld [vmem:[#allocation6 + $0x28] sm:$0xff]   ;;  %v571_v6 = vld [vmem:[#allocation6 + $0x20] sm:$0xff]   ;;  %vm709_vm0 = vmmov 0   ;;  %s243_s22 = sld [smem:[#allocation2]] }
  0x4b   : > { %683 = vsyncadd (%p931_p6), [#allocation7], 4294966272  ;;  %v231_v1 = vmul.f32 %v230_v0, %v230_v0  ;;  %v568_v2 = vld [vmem:[#allocation6 + $0x38] sm:$0xff]   ;;  %487 = vmatprep.subr.bf16.mxu0 %v708_v3  ;;  %v569_v4 = vld [vmem:[#allocation6 + $0x30] sm:$0xff]   ;;  %503 = vmatprep.mubr.msk.bf16.mxu0 %vm709_vm0, %v708_v3  ;;  %s475_s27 = sshll.u32 %s760_s3, 7  ;;  %s228_s29 = scalar_lea.vmem [#allocation8], %s462_s25 }
  0x4c   : > { %488 = vmatpush3.bf16.msra.mxu0 %v568_v2  ;;  %v572_v7 = vld [vmem:[#allocation6 + $0x18] sm:$0xff]   ;;  %v573_v8 = vld [vmem:[#allocation6 + $0x10] sm:$0xff]   ;;  %v574_v9 = vld [vmem:[#allocation6 + $0x8] sm:$0xff]   ;;  %s375_s6 = sshll.u32 %s228_s29, 4  ;;  %s869_s9 = scalar_lea.hbm %s916_s4, %s475_s27  ;;  %s871_s6 = int_to_ptr.vmem [resolvable:$true] %s375_s6 }
  0x4d   : > { %232 = vadd.xlane.f32.xlu0 %v231_v1  ;;  %489 = vmatprep.subr.bf16.mxu0 %v708_v3  ;;  %v575_v10 = vld [vmem:[#allocation6] sm:$0xff]   ;;  %v465_v23 = vld [vmem:[%s914_s2] ss:$0 sm:$0xff]  ;;  %s362_s13 = scalar_lea.sflag [#allocation5], %s846_s16  ;;  %s634_s3 = scalar_lea.vmem %s871_s6, 128 }
  0x4e   : > { %p635_p8 = scmp.ne.s32.totalorder %s871_s6, %s634_s3  ;;  %p932_p3 = scmp.ne.s32.totalorder %s926_s11, 0 }
  0x4f   : > { %s710_s12 = smov [#allocation8]  }
  0x50   : > { %490 = vmatpush3.bf16.msra.mxu0 %v569_v4  ;;  %s244_s24 = ssub.f32 0.0, %s243_s22  ;;  %p636_p11 = pnand %p635_p8, %p932_p3 }
  0x51   : > { %491 = vmatprep.subr.bf16.mxu0 %v708_v3  ;;  %s638_s14 = sshll.u32 %s710_s12, 4  ;;  %s639_s14 = int_to_ptr.vmem [resolvable:$false] %s638_s14 }
  0x52   : > { %v245_v18 = vstv %s244_s24  ;;  %p637_p7 = pneg %p636_p11  ;;  %s640_s15 = scalar_lea.vmem %s639_s14, 256 }
  0x53   : > { %p641_p10 = scmp.lt.s32.totalorder %s871_s6, %s639_s14  ;;  %p642_p2 = scmp.lt.s32.totalorder %s640_s15, %s634_s3 }
  0x54   : > { %492 = vmatpush3.bf16.msra.mxu0 %v570_v5 }
  0x55   : > { %493 = vmatprep.subr.bf16.mxu0 %v708_v3  ;;  %p643_p13 = por %p642_p2, %p641_p10 }
  0x57   : > { %p644_p0 = pnand %p643_p13, %p637_p7 }
  0x58   : > { %494 = vmatpush3.bf16.msra.mxu0 %v571_v6 }
  0x59   : > { %495 = vmatprep.subr.bf16.mxu0 %v708_v3 }
  0x5c   : > { %496 = vmatpush3.bf16.msra.mxu0 %v572_v7 }
  0x5d   : > { %497 = vmatprep.subr.bf16.mxu0 %v708_v3 }
  0x60   : > { %498 = vmatpush3.bf16.msra.mxu0 %v573_v8 }
  0x61   : > { %499 = vmatprep.subr.bf16.mxu0 %v708_v3 }
  0x64   : > { %500 = vmatpush3.bf16.msra.mxu0 %v574_v9 }
  0x65   : > { %501 = vmatprep.subr.bf16.mxu0 %v708_v3 }
  0x68   : > { %502 = vmatpush3.bf16.msra.mxu0 %v575_v10 }
  0xd6   : > { %v233_v11 = vpop.xlane.xlu0 %232 }
  0xd7   : > { %576 = vrsqrt.f32 %v233_v11  ;;  %vm236_vm1 = vcmp.eq.f32.partialorder %v233_v11, inf  ;;  %v239_v14 = vand.u32 2147483648, %v233_v11  ;;  %vm238_vm2 = vcmp.eq.f32.partialorder %v233_v11, 0.0 }
  0xe4   : > { %v577_v12 = vpop.eup %576 }
  0xe5   : > { %v235_v13 = vmul.f32 %v577_v12, %v233_v11 }
  0xe7   : > { %v237_v15 = vsel %vm236_vm1, %v233_v11, %v235_v13 }
  0xe8   : > { %v240_v16 = vsel %vm238_vm2, %v239_v14, %v237_v15 }
  0xe9   : > { %v241_v17 = vadd.f32 1e-08, %v240_v16 }
  0xeb   : > { %578 = vrcp.f32 %v241_v17 }
  0xf8   : > { %v579_v19 = vpop.eup %578 }
  0xf9   : > { %v246_v20 = vmul.f32 %v579_v19, %v245_v18 }
  0xfb   : > { %v247_v21 = vmul.f32 %v246_v20, %v230_v0 }
  0xfd   : > { %v248_v22 = vpack.c.bf16 %v247_v21, %v247_v21 }
  0xff   : > { %504 = vmatmul.mubr.bf16.vlgmr.msra.gmra.mxu0 %v248_v22 }
 0x1bf   : > { %v354_v24 = vpop.f32.mrf.mxu0 }
 0x1c0   : > { %v355_v25 = vadd.f32 %v465_v23, %v354_v24 }
 0x1c1   : > { %v505_v26 = vpop.f32.mrf.mxu0 }
 0x1c2   : > { %360 = vst [vmem:[%s228_s29] sm:$0xff] %v355_v25 }
 0x1c3   : > { %v357_v27 = vpop.f32.mrf.mxu0 }
 0x1c4   : > { %647 = shalt.err (!%p644_p0)
}
 0x1c5   : > { %s648_s25 = scalar_lea.hbm %s869_s9, 128  ;;  %s652_s5 = scalar_lea.hbm %s916_s4, 256 }
 0x1c6   : > { %p649_p5 = scmp.ne.s32.totalorder %s869_s9, %s648_s25  ;;  %p653_p1 = scmp.lt.s32.totalorder %s869_s9, %s916_s4 }
 0x1c7   : > { %p654_p4 = scmp.lt.s32.totalorder %s652_s5, %s648_s25 }
 0x1c8   : > { %p650_p9 = pnand %p649_p5, %p932_p3 }
 0x1c9   : > { %p655_p6 = por %p654_p4, %p653_p1 }
 0x1ca   : > { %p651_p12 = pneg %p650_p9 }
 0x1cc   : > { %p656_p8 = pnand %p655_p6, %p651_p12 }
 0x1ce   : > { %659 = shalt.err (!%p656_p8)
}
 0x1cf   : > { %513 = dma.vmem_to_hbm [thread:$0]  (%p932_p3), %s871_s6, 128, %s869_s9, %s362_s13   ;;  %v506_v28 = vpop.f32.mrf.mxu0 }
 0x1d0 PF: > { %s387_s21 = sand.u32 1, %s690_s17   ;;  %p933_p11 = scmp.ne.s32.totalorder %s922_s23, 0 }
 0x1d1   : > { %p934_p7 = scmp.ge.s32.totalorder %s702_s20, 2  ;;  %s388_s26 = scalar_lea.sflag [#allocation5], %s387_s21 }
 0x1d3   : > { %p524_p10 = pnand %p934_p7, %p933_p11 }
 0x1d5   : > { %p525_p2 = pneg %p524_p10 }
 0x1d7   : > { %685 = dma.done.wait (%p525_p2), %s388_s26, 128  }
 0x1d8   : > { %687 = vsyncadd (%p525_p2), %s388_s26, 4294967168  ;;  %p19_p13 = scmp.ge.s32.totalorder %s793_s28, 4   ;;  %s935_s17 = smov %s694_s18 }
 0x1d9   : > { %s936_s18 = smov %s698_s19  ;;  %s937_s19 = smov %s810_s10 }
 0x1da   : > { %s938_s20 = smov %s793_s28  ;;  %21 = sbr.rel (!%p19_p13) target bundleno = 8 (0x8), region = 85 }
 0x1df   :  { %393 = vsyncpa [#allocation4], 1 }
 0x1e0   :  { %395 = vsyncpa [#allocation4 + $0x1], 1 }
 0x1e1   :  { %396 = vsyncpa [#allocation7], 1 }
 0x1e2   :  { %397 = vsyncpa [#allocation5], 1 }
 0x1e3   :  { %399 = vsyncpa [#allocation5 + $0x1], 1 }

</bundles_post_ra>
